<compile_context>
chip_gen: v5e
topology: v5e:2x2
jax: 0.10.0
libtpu: 0.0.40
codegen_flags: <defaults>
</compile_context>

<pallas_src>
import functools

import jax
import jax.numpy as jnp
from jax import lax
from jax.experimental import pallas as pl
from jax.experimental.pallas import tpu as pltpu


def _l2_normalize(x):
    # F.normalize(x, dim=1, eps=1e-12) == x * rsqrt(max(sum(x^2), 1e-24))
    ssq = jnp.sum(x * x, axis=-1, keepdims=True)
    return x * lax.rsqrt(jnp.maximum(ssq, 1e-24))


def ntxent_kernel(ei_full_ref, ej_full_ref, ei_blk_ref, ej_blk_ref,
                  loss_i_ref, loss_j_ref, *, inv_temp: float):
    # Resident full views (columns of the similarity), normalized in-kernel so
    # every grid step is self-contained (safe under "parallel" / megacore).
    z_ci = _l2_normalize(ei_full_ref[...].astype(jnp.float32))   # [B, D]
    z_cj = _l2_normalize(ej_full_ref[...].astype(jnp.float32))   # [B, D]

    # Current row blocks (one from each view).
    z_ri = _l2_normalize(ei_blk_ref[...].astype(jnp.float32))    # [TM, D]
    z_rj = _l2_normalize(ej_blk_ref[...].astype(jnp.float32))    # [TM, D]

    # positives[r] = <z_i[r], z_j[r]> (identical for the i-half and j-half).
    pos = jnp.sum(z_ri * z_rj, axis=-1, keepdims=True)           # [TM, 1]

    dn = (((1,), (1,)), ((), ()))   # contract dim 1 of both operands (A @ B^T)

    def half_loss(z_rows):
        # Diagonal correction: <z_r, z_r> (== 1 after normalization, but keep
        # the exact value so degenerate rows match the reference).
        self_sim = jnp.sum(z_rows * z_rows, axis=-1, keepdims=True)   # [TM,1]
        s_a = lax.dot_general(z_rows, z_ci, dn,
                              preferred_element_type=jnp.float32)     # [TM,B]
        s_b = lax.dot_general(z_rows, z_cj, dn,
                              preferred_element_type=jnp.float32)     # [TM,B]
        denom = (jnp.sum(jnp.exp(s_a * inv_temp), axis=-1, keepdims=True)
                 + jnp.sum(jnp.exp(s_b * inv_temp), axis=-1, keepdims=True)
                 - jnp.exp(self_sim * inv_temp))
        # -log(exp(pos/T) / denom) == log(denom) - pos/T
        return jnp.log(denom) - pos * inv_temp

    loss_i_ref[...] = half_loss(z_ri)
    loss_j_ref[...] = half_loss(z_rj)


def _pick_block_rows(b: int) -> int:
    for tm in (512, 256, 128, 64, 32, 16, 8):
        if b % tm == 0:
            return tm
    return b   # small / odd batch -> single (full) row block


def contrastive_loss(emb_i, emb_j, temperature: float = 0.5, block_rows=None):
    assert emb_i.shape == emb_j.shape and emb_i.ndim == 2
    b, d = emb_i.shape
    tm = block_rows if block_rows is not None else _pick_block_rows(b)
    assert b % tm == 0, "block_rows must divide the batch size"
    nb = b // tm

    kernel = functools.partial(ntxent_kernel,
                               inv_temp=float(1.0 / temperature))

    full_spec = pl.BlockSpec((b, d), lambda i: (0, 0))    # resident in VMEM
    blk_spec = pl.BlockSpec((tm, d), lambda i: (i, 0))    # pipelined row block
    out_spec = pl.BlockSpec((tm, 1), lambda i: (i, 0))

    loss_i_rows, loss_j_rows = pl.pallas_call(
        kernel,
        out_shape=(jax.ShapeDtypeStruct((b, 1), jnp.float32),
                   jax.ShapeDtypeStruct((b, 1), jnp.float32)),
        grid=(nb,),
        in_specs=[full_spec, full_spec, blk_spec, blk_spec],
        out_specs=(out_spec, out_spec),
        compiler_params=pltpu.CompilerParams(
            dimension_semantics=("parallel",),
            vmem_limit_bytes=64 * 1024 * 1024,
        ),
    )(emb_i, emb_j, emb_i, emb_j)

    # Tiny final reduction over 2B scalars; kept in plain JAX so the row-block
    # axis can stay "parallel" (megacore-safe on v7x).
    return (jnp.sum(loss_i_rows) + jnp.sum(loss_j_rows)) / (2 * b)


def contrastive_loss_ref(emb_i, emb_j, temperature: float = 0.5):
    """Pure-JAX reference mirroring the PyTorch module."""
    b = emb_i.shape[0]
    zi = emb_i / jnp.maximum(jnp.linalg.norm(emb_i, axis=1, keepdims=True), 1e-12)
    zj = emb_j / jnp.maximum(jnp.linalg.norm(emb_j, axis=1, keepdims=True), 1e-12)
    reps = jnp.concatenate([zi, zj], axis=0)
    sim = reps @ reps.T
    sim_ij = jnp.diagonal(sim, offset=b)
    sim_ji = jnp.diagonal(sim, offset=-b)
    positives = jnp.concatenate([sim_ij, sim_ji], axis=0)
    neg_mask = 1.0 - jnp.eye(2 * b, dtype=jnp.float32)
    nominator = jnp.exp(positives / temperature)
    denominator = jnp.sum(neg_mask * jnp.exp(sim / temperature), axis=1)
    loss_partial = -jnp.log(nominator / denominator)
    return jnp.sum(loss_partial) / (2 * b)


if __name__ == "__main__":
    # Module params (deterministic, in-script): temperature = 0.5,
    # negatives_mask = ~eye(2B) (realized via the diagonal correction).
    batch_size = 16
    hidden = 128
    temperature = 0.5

    key = jax.random.PRNGKey(0)
    k_i, k_j = jax.random.split(key)
    emb_i = jax.random.normal(k_i, (batch_size, hidden), dtype=jnp.float32)
    emb_j = jax.random.normal(k_j, (batch_size, hidden), dtype=jnp.float32)

    ref = contrastive_loss_ref(emb_i, emb_j, temperature)

    # Default tiling (single row block at this size).
    loss = jax.block_until_ready(contrastive_loss(emb_i, emb_j, temperature))
    assert jnp.allclose(loss, ref, rtol=1e-5, atol=1e-5), (loss, ref)

    # Multi-block grid path (row-block tiling + parallel grid exercised).
    loss_tiled = jax.block_until_ready(
        contrastive_loss(emb_i, emb_j, temperature, block_rows=8))
    assert jnp.allclose(loss_tiled, ref, rtol=1e-5, atol=1e-5), (loss_tiled, ref)

    print("KERNEL_OK")
</pallas_src>

<mosaic_0001>
module attributes {stable_mosaic.version = 11 : i64} {
  func.func @ntxent_kernel(%arg0: i32, %arg1: memref<16x128xf32, #tpu.memory_space<vmem>>, %arg2: memref<16x128xf32, #tpu.memory_space<vmem>>, %arg3: memref<16x128xf32, #tpu.memory_space<vmem>>, %arg4: memref<16x128xf32, #tpu.memory_space<vmem>>, %arg5: memref<16x1xf32, #tpu.memory_space<vmem>>, %arg6: memref<16x1xf32, #tpu.memory_space<vmem>>) attributes {dimension_semantics = [#tpu.dimension_semantics<parallel>], iteration_bounds = array<i64: 1>, scalar_prefetch = 0 : i64, scratch_operands = 0 : i64, tpu.core_type = #tpu.core_type<tc>, window_params = [{pipeline_mode = #tpu.pipeline_mode<synchronous>, transform_indices = @transform_0, window_bounds = array<i64: 16, 128>}, {pipeline_mode = #tpu.pipeline_mode<synchronous>, transform_indices = @transform_1, window_bounds = array<i64: 16, 128>}, {transform_indices = @transform_2, window_bounds = array<i64: 16, 128>}, {transform_indices = @transform_3, window_bounds = array<i64: 16, 128>}, {transform_indices = @transform_4, window_bounds = array<i64: 16, 1>}, {transform_indices = @transform_5, window_bounds = array<i64: 16, 1>}]} {
    %c0 = arith.constant 0 : index
    %c0_0 = arith.constant 0 : index
    %0 = vector.load %arg1[%c0, %c0_0] : memref<16x128xf32, #tpu.memory_space<vmem>>, vector<16x128xf32>
    %1 = arith.mulf %0, %0 : vector<16x128xf32>
    %cst = arith.constant dense<0.000000e+00> : vector<16xf32>
    %2 = vector.multi_reduction <add>, %1, %cst [1] : vector<16x128xf32> to vector<16xf32>
    %3 = vector.shape_cast %2 : vector<16xf32> to vector<16x1xf32>
    %cst_1 = arith.constant 1.000000e-24 : f32
    %4 = vector.broadcast %cst_1 : f32 to vector<16x1xf32>
    %5 = arith.maximumf %3, %4 : vector<16x1xf32>
    %6 = math.rsqrt %5 : vector<16x1xf32>
    %7 = vector.broadcast %6 : vector<16x1xf32> to vector<16x128xf32>
    %8 = arith.mulf %0, %7 : vector<16x128xf32>
    %c0_2 = arith.constant 0 : index
    %c0_3 = arith.constant 0 : index
    %9 = vector.load %arg2[%c0_2, %c0_3] : memref<16x128xf32, #tpu.memory_space<vmem>>, vector<16x128xf32>
    %10 = arith.mulf %9, %9 : vector<16x128xf32>
    %cst_4 = arith.constant dense<0.000000e+00> : vector<16xf32>
    %11 = vector.multi_reduction <add>, %10, %cst_4 [1] : vector<16x128xf32> to vector<16xf32>
    %12 = vector.shape_cast %11 : vector<16xf32> to vector<16x1xf32>
    %cst_5 = arith.constant 1.000000e-24 : f32
    %13 = vector.broadcast %cst_5 : f32 to vector<16x1xf32>
    %14 = arith.maximumf %12, %13 : vector<16x1xf32>
    %15 = math.rsqrt %14 : vector<16x1xf32>
    %16 = vector.broadcast %15 : vector<16x1xf32> to vector<16x128xf32>
    %17 = arith.mulf %9, %16 : vector<16x128xf32>
    %c0_6 = arith.constant 0 : index
    %c0_7 = arith.constant 0 : index
    %18 = vector.load %arg3[%c0_6, %c0_7] : memref<16x128xf32, #tpu.memory_space<vmem>>, vector<16x128xf32>
    %19 = arith.mulf %18, %18 : vector<16x128xf32>
    %cst_8 = arith.constant dense<0.000000e+00> : vector<16xf32>
    %20 = vector.multi_reduction <add>, %19, %cst_8 [1] : vector<16x128xf32> to vector<16xf32>
    %21 = vector.shape_cast %20 : vector<16xf32> to vector<16x1xf32>
    %cst_9 = arith.constant 1.000000e-24 : f32
    %22 = vector.broadcast %cst_9 : f32 to vector<16x1xf32>
    %23 = arith.maximumf %21, %22 : vector<16x1xf32>
    %24 = math.rsqrt %23 : vector<16x1xf32>
    %25 = vector.broadcast %24 : vector<16x1xf32> to vector<16x128xf32>
    %26 = arith.mulf %18, %25 : vector<16x128xf32>
    %c0_10 = arith.constant 0 : index
    %c0_11 = arith.constant 0 : index
    %27 = vector.load %arg4[%c0_10, %c0_11] : memref<16x128xf32, #tpu.memory_space<vmem>>, vector<16x128xf32>
    %28 = arith.mulf %27, %27 : vector<16x128xf32>
    %cst_12 = arith.constant dense<0.000000e+00> : vector<16xf32>
    %29 = vector.multi_reduction <add>, %28, %cst_12 [1] : vector<16x128xf32> to vector<16xf32>
    %30 = vector.shape_cast %29 : vector<16xf32> to vector<16x1xf32>
    %cst_13 = arith.constant 1.000000e-24 : f32
    %31 = vector.broadcast %cst_13 : f32 to vector<16x1xf32>
    %32 = arith.maximumf %30, %31 : vector<16x1xf32>
    %33 = math.rsqrt %32 : vector<16x1xf32>
    %34 = vector.broadcast %33 : vector<16x1xf32> to vector<16x128xf32>
    %35 = arith.mulf %27, %34 : vector<16x128xf32>
    %36 = arith.mulf %26, %35 : vector<16x128xf32>
    %cst_14 = arith.constant dense<0.000000e+00> : vector<16xf32>
    %37 = vector.multi_reduction <add>, %36, %cst_14 [1] : vector<16x128xf32> to vector<16xf32>
    %38 = vector.shape_cast %37 : vector<16xf32> to vector<16x1xf32>
    %39 = arith.mulf %26, %26 : vector<16x128xf32>
    %cst_15 = arith.constant dense<0.000000e+00> : vector<16xf32>
    %40 = vector.multi_reduction <add>, %39, %cst_15 [1] : vector<16x128xf32> to vector<16xf32>
    %41 = vector.shape_cast %40 : vector<16xf32> to vector<16x1xf32>
    %cst_16 = arith.constant dense<0.000000e+00> : vector<16x16xf32>
    %42 = tpu.matmul %26, %8, %cst_16 {dimension_numbers = #tpu.dot_dimension_numbers<[1], [1], [0], [0], [0, 0, 1, 0], [], []>} : vector<16x128xf32>, vector<16x128xf32>, vector<16x16xf32> -> vector<16x16xf32>
    %cst_17 = arith.constant dense<0.000000e+00> : vector<16x16xf32>
    %43 = tpu.matmul %26, %17, %cst_17 {dimension_numbers = #tpu.dot_dimension_numbers<[1], [1], [0], [0], [0, 0, 1, 0], [], []>} : vector<16x128xf32>, vector<16x128xf32>, vector<16x16xf32> -> vector<16x16xf32>
    %cst_18 = arith.constant 2.000000e+00 : f32
    %44 = vector.broadcast %cst_18 : f32 to vector<16x16xf32>
    %45 = arith.mulf %42, %44 : vector<16x16xf32>
    %46 = math.exp %45 : vector<16x16xf32>
    %cst_19 = arith.constant dense<0.000000e+00> : vector<16xf32>
    %47 = vector.multi_reduction <add>, %46, %cst_19 [1] : vector<16x16xf32> to vector<16xf32>
    %48 = vector.shape_cast %47 : vector<16xf32> to vector<16x1xf32>
    %cst_20 = arith.constant 2.000000e+00 : f32
    %49 = vector.broadcast %cst_20 : f32 to vector<16x16xf32>
    %50 = arith.mulf %43, %49 : vector<16x16xf32>
    %51 = math.exp %50 : vector<16x16xf32>
    %cst_21 = arith.constant dense<0.000000e+00> : vector<16xf32>
    %52 = vector.multi_reduction <add>, %51, %cst_21 [1] : vector<16x16xf32> to vector<16xf32>
    %53 = vector.shape_cast %52 : vector<16xf32> to vector<16x1xf32>
    %54 = arith.addf %48, %53 : vector<16x1xf32>
    %cst_22 = arith.constant 2.000000e+00 : f32
    %55 = vector.broadcast %cst_22 : f32 to vector<16x1xf32>
    %56 = arith.mulf %41, %55 : vector<16x1xf32>
    %57 = math.exp %56 : vector<16x1xf32>
    %58 = arith.subf %54, %57 : vector<16x1xf32>
    %59 = math.log %58 : vector<16x1xf32>
    %cst_23 = arith.constant 2.000000e+00 : f32
    %60 = vector.broadcast %cst_23 : f32 to vector<16x1xf32>
    %61 = arith.mulf %38, %60 : vector<16x1xf32>
    %62 = arith.subf %59, %61 : vector<16x1xf32>
    %c0_24 = arith.constant 0 : index
    %c0_25 = arith.constant 0 : index
    %63 = vector.load %arg5[%c0_24, %c0_25] : memref<16x1xf32, #tpu.memory_space<vmem>>, vector<16x1xf32>
    tpu.vector_store %arg5[%c0_24, %c0_25], %62 {strides = array<i32>} : memref<16x1xf32, #tpu.memory_space<vmem>>, vector<16x1xf32>,
    %64 = arith.mulf %35, %35 : vector<16x128xf32>
    %cst_26 = arith.constant dense<0.000000e+00> : vector<16xf32>
    %65 = vector.multi_reduction <add>, %64, %cst_26 [1] : vector<16x128xf32> to vector<16xf32>
    %66 = vector.shape_cast %65 : vector<16xf32> to vector<16x1xf32>
    %cst_27 = arith.constant dense<0.000000e+00> : vector<16x16xf32>
    %67 = tpu.matmul %35, %8, %cst_27 {dimension_numbers = #tpu.dot_dimension_numbers<[1], [1], [0], [0], [0, 0, 1, 0], [], []>} : vector<16x128xf32>, vector<16x128xf32>, vector<16x16xf32> -> vector<16x16xf32>
    %cst_28 = arith.constant dense<0.000000e+00> : vector<16x16xf32>
    %68 = tpu.matmul %35, %17, %cst_28 {dimension_numbers = #tpu.dot_dimension_numbers<[1], [1], [0], [0], [0, 0, 1, 0], [], []>} : vector<16x128xf32>, vector<16x128xf32>, vector<16x16xf32> -> vector<16x16xf32>
    %cst_29 = arith.constant 2.000000e+00 : f32
    %69 = vector.broadcast %cst_29 : f32 to vector<16x16xf32>
    %70 = arith.mulf %67, %69 : vector<16x16xf32>
    %71 = math.exp %70 : vector<16x16xf32>
    %cst_30 = arith.constant dense<0.000000e+00> : vector<16xf32>
    %72 = vector.multi_reduction <add>, %71, %cst_30 [1] : vector<16x16xf32> to vector<16xf32>
    %73 = vector.shape_cast %72 : vector<16xf32> to vector<16x1xf32>
    %cst_31 = arith.constant 2.000000e+00 : f32
    %74 = vector.broadcast %cst_31 : f32 to vector<16x16xf32>
    %75 = arith.mulf %68, %74 : vector<16x16xf32>
    %76 = math.exp %75 : vector<16x16xf32>
    %cst_32 = arith.constant dense<0.000000e+00> : vector<16xf32>
    %77 = vector.multi_reduction <add>, %76, %cst_32 [1] : vector<16x16xf32> to vector<16xf32>
    %78 = vector.shape_cast %77 : vector<16xf32> to vector<16x1xf32>
    %79 = arith.addf %73, %78 : vector<16x1xf32>
    %cst_33 = arith.constant 2.000000e+00 : f32
    %80 = vector.broadcast %cst_33 : f32 to vector<16x1xf32>
    %81 = arith.mulf %66, %80 : vector<16x1xf32>
    %82 = math.exp %81 : vector<16x1xf32>
    %83 = arith.subf %79, %82 : vector<16x1xf32>
    %84 = math.log %83 : vector<16x1xf32>
    %cst_34 = arith.constant 2.000000e+00 : f32
    %85 = vector.broadcast %cst_34 : f32 to vector<16x1xf32>
    %86 = arith.mulf %38, %85 : vector<16x1xf32>
    %87 = arith.subf %84, %86 : vector<16x1xf32>
    %c0_35 = arith.constant 0 : index
    %c0_36 = arith.constant 0 : index
    %88 = vector.load %arg6[%c0_35, %c0_36] : memref<16x1xf32, #tpu.memory_space<vmem>>, vector<16x1xf32>
    tpu.vector_store %arg6[%c0_35, %c0_36], %87 {strides = array<i32>} : memref<16x1xf32, #tpu.memory_space<vmem>>, vector<16x1xf32>,
    return
  }
  func.func @transform_0(%arg0: i32) -> (i32, i32) {
    %c0_i32 = arith.constant 0 : i32
    %c0_i32_0 = arith.constant 0 : i32
    %c0_i32_1 = arith.constant 0 : i32
    return %c0_i32, %c0_i32_0 : i32, i32
  }
  func.func @transform_1(%arg0: i32) -> (i32, i32) {
    %c0_i32 = arith.constant 0 : i32
    %c0_i32_0 = arith.constant 0 : i32
    %c0_i32_1 = arith.constant 0 : i32
    return %c0_i32, %c0_i32_0 : i32, i32
  }
  func.func @transform_2(%arg0: i32) -> (i32, i32) {
    %c0_i32 = arith.constant 0 : i32
    %c0_i32_0 = arith.constant 0 : i32
    return %arg0, %c0_i32 : i32, i32
  }
  func.func @transform_3(%arg0: i32) -> (i32, i32) {
    %c0_i32 = arith.constant 0 : i32
    %c0_i32_0 = arith.constant 0 : i32
    return %arg0, %c0_i32 : i32, i32
  }
  func.func @transform_4(%arg0: i32) -> (i32, i32) {
    %c0_i32 = arith.constant 0 : i32
    %c0_i32_0 = arith.constant 0 : i32
    return %arg0, %c0_i32 : i32, i32
  }
  func.func @transform_5(%arg0: i32) -> (i32, i32) {
    %c0_i32 = arith.constant 0 : i32
    %c0_i32_0 = arith.constant 0 : i32
    return %arg0, %c0_i32 : i32, i32
  }
}

</mosaic_0001>

<bundles_post_ra>
// kernel: tpu_custom_call.1
= control target key start
LH: loop header
LB: loop body
LE: loop exit
PB: predicated region body
PF: predicated region fallthrough
CT: control target
= control target key end

     0   :  { %11 = vsyncpa [#allocation3], 0  ;;  %s757_s0 = inlined_call_operand.hbm [shape: f32[16,128], index: 0, kind: input, shape index: {}]   ;;  %s758_s1 = inlined_call_operand.hbm [shape: f32[16,128], index: 1, kind: input, shape index: {}]   ;;  %s759_s2 = inlined_call_operand.hbm [shape: f32[16,128], index: 2, kind: input, shape index: {}]   ;;  %s760_s3 = inlined_call_operand.hbm [shape: f32[16,128], index: 3, kind: input, shape index: {}]   ;;  %s761_s4 = inlined_call_operand.vmem [shape: f32[16,1], index: 4, kind: output, shape index: {0}]   ;;  %s762_s5 = inlined_call_operand.vmem [shape: f32[16,1], index: 5, kind: output, shape index: {1}]  }
   0x1   :  { %12 = vsyncpa [#allocation5], 0 }
   0x2   :  { %13 = vsyncpa [#allocation8], 0  ;;  %s31_s20 = sshll.u32 %s758_s1, 4  ;;  %s575_s21 = smov [#allocation4]   ;;  %s32_s20 = int_to_ptr.hbm [resolvable:$true] %s31_s20 }
   0x3   :  { %s33_s22 = sshll.u32 %s575_s21, 4  ;;  %s18_s25 = sshll.u32 %s757_s0, 4  ;;  %s34_s22 = int_to_ptr.vmem [resolvable:$true] %s33_s22  ;;  %s19_s25 = int_to_ptr.hbm [resolvable:$true] %s18_s25 }
   0x4   :  { %s576_s26 = smov 128   ;;  %s577_s27 = smov 8  }
   0x5   :  { %39 = dma.hbm_to_vmem [thread:$0]  %s32_s20, 256, %s34_s22, [#allocation5], %s576_s26, %s576_s26, %s577_s27  }
   0x6   :  { %s578_s28 = smov [#allocation2]   ;;  %s44_s7 = sshll.u32 %s759_s2, 4  ;;  %s45_s7 = int_to_ptr.hbm [resolvable:$true] %s44_s7 }
   0x7   :  { %s20_s29 = sshll.u32 %s578_s28, 4  ;;  %s57_s9 = sshll.u32 %s760_s3, 4  ;;  %s21_s29 = int_to_ptr.vmem [resolvable:$true] %s20_s29  ;;  %s58_s9 = int_to_ptr.hbm [resolvable:$true] %s57_s9 }
   0x8   :  { %26 = dma.hbm_to_vmem [thread:$0]  %s19_s25, 256, %s21_s29, [#allocation3], %s576_s26, %s576_s26, %s577_s27  }
   0x9   :  { %s579_s10 = smov [#allocation6]   ;;  %s580_s0 = smov [#allocation7]  }
   0xa   :  { %s46_s11 = sshll.u32 %s579_s10, 4  ;;  %s59_s12 = sshll.u32 %s580_s0, 4  ;;  %s47_s11 = int_to_ptr.vmem [resolvable:$true] %s46_s11  ;;  %s60_s12 = int_to_ptr.vmem [resolvable:$true] %s59_s12 }
   0xb   :  { %52 = dma.hbm_to_vmem [thread:$0]  %s45_s7, 256, %s47_s11, [#allocation5], %s576_s26, %s576_s26, %s577_s27  }
   0xc   :  { %65 = dma.hbm_to_vmem [thread:$0]  %s58_s9, 256, %s60_s12, [#allocation8], %s576_s26, %s576_s26, %s577_s27  }
   0xd   :  { %569 = dma.done.wait [#allocation3], 256  }
   0xe   :  { %570 = vsyncadd [#allocation3], 4294967040 }
   0xf   :  { %571 = dma.done.wait [#allocation5], 512  }
  0x10   :  { %572 = vsyncadd [#allocation5], 4294966784 }
  0x11   :  { %573 = dma.done.wait [#allocation8], 256  }
  0x12   :  { %574 = vsyncadd [#allocation8], 4294967040  ;;  %v623_v0 = vld [vmem:[#allocation7] sm:$0xff]  ;;  %v625_v1 = vld [vmem:[#allocation2 + $0x8] sm:$0xff] }
  0x13   :  { %v627_v2 = vld [vmem:[#allocation2] sm:$0xff]  ;;  %v180_v3 = vmul.f32 %v623_v0, %v623_v0  ;;  %v85_v4 = vmul.f32 %v625_v1, %v625_v1  ;;  %v637_v7 = vld [vmem:[#allocation4 + $0x8] sm:$0xff]  ;;  %v639_v8 = vld [vmem:[#allocation4] sm:$0xff] }
  0x14   :  { %v84_v5 = vmul.f32 %v627_v2, %v627_v2  ;;  %v635_v6 = vld [vmem:[#allocation6] sm:$0xff]  ;;  %v117_v10 = vmul.f32 %v637_v7, %v637_v7  ;;  %v116_v11 = vmul.f32 %v639_v8, %v639_v8  ;;  %v647_v12 = vld [vmem:[#allocation7 + $0x8] sm:$0xff]  ;;  %v649_v13 = vld [vmem:[#allocation6 + $0x8] sm:$0xff] }
  0x15   :  { %182 = vadd.xlane.f32.xlu2 %v180_v3  ;;  %88 = vadd.xlane.f32.xlu0 %v85_v4  ;;  %v148_v9 = vmul.f32 %v635_v6, %v635_v6  ;;  %v181_v14 = vmul.f32 %v647_v12, %v647_v12  ;;  %v149_v15 = vmul.f32 %v649_v13, %v649_v13 }
  0x16   :  { %86 = vadd.xlane.f32.xlu1 %v84_v5 }
  0x1d   :  { %150 = vadd.xlane.f32.xlu2 %v148_v9  ;;  %120 = vadd.xlane.f32.xlu0 %v117_v10 }
  0x1e   :  { %118 = vadd.xlane.f32.xlu1 %v116_v11 }
  0x25   :  { %184 = vadd.xlane.f32.xlu0 %v181_v14 }
  0x26   :  { %152 = vadd.xlane.f32.xlu1 %v149_v15 }
  0x88   :  { %v183_v16 = vpop.xlane.xlu2 %182  ;;  %v89_v17 = vpop.xlane.xlu0 %88 }
  0x89   :  { %v186_v18 = vmax.f32 %v183_v16, 1e-24  ;;  %v91_v19 = vmax.f32 %v89_v17, 1e-24  ;;  %v87_v20 = vpop.xlane.xlu1 %86 }
  0x8a   :  { %v90_v21 = vmax.f32 %v87_v20, 1e-24 }
  0x8b   :  { %425 = vrsqrt.f32 %v186_v18  ;;  %vm194_vm0 = vweird.f32 %v186_v18  ;;  %vm108_vm2 = vweird.f32 %v91_v19 }
  0x8c   :  { %427 = vrsqrt.f32 %v91_v19  ;;  %vm98_vm6 = vweird.f32 %v90_v21 }
  0x8d   :  { %429 = vrsqrt.f32 %v90_v21 }
  0x90   :  { %v151_v22 = vpop.xlane.xlu2 %150  ;;  %v121_v23 = vpop.xlane.xlu0 %120 }
  0x91   :  { %v426_v24 = vpop.eup %425  ;;  %v655_v25 = vmax.f32 %v151_v22, 1e-24  ;;  %v657_v26 = vmax.f32 %v121_v23, 1e-24  ;;  %v119_v27 = vpop.xlane.xlu1 %118 }
  0x92   :  { %v428_v28 = vpop.eup %427  ;;  %v189_v29 = vmul.f32 %v426_v24, %v186_v18  ;;  %v659_v30 = vmax.f32 %v119_v27, 1e-24  ;;  %vm195_vm1 = vweird.f32 %v426_v24 }
  0x93   :  { %v661_v31 = vpop.eup %429  ;;  %v103_v32 = vmul.f32 %v428_v28, %v91_v19  ;;  %431 = vrsqrt.f32 %v655_v25  ;;  %vm109_vm3 = vweird.f32 %v428_v28  ;;  %vm196_vm4 = vmor %vm194_vm0, %vm195_vm1  ;;  %vm162_vm8 = vweird.f32 %v655_v25 }
  0x94   :  { %v190_v33 = vmul.f32 %v426_v24, %v189_v29  ;;  %v93_v34 = vmul.f32 %v661_v31, %v90_v21  ;;  %433 = vrsqrt.f32 %v657_v26  ;;  %vm99_vm5 = vweird.f32 %v661_v31  ;;  %vm110_vm7 = vmor %vm108_vm2, %vm109_vm3 }
  0x95   :  { %v104_v35 = vmul.f32 %v428_v28, %v103_v32  ;;  %435 = vrsqrt.f32 %v659_v30  ;;  %vm695_vm9 = vmor %vm98_vm6, %vm99_vm5  ;;  %vm140_vm13 = vweird.f32 %v657_v26  ;;  %vm130_vm0 = vweird.f32 %v659_v30 }
  0x96   :  { %v191_v36 = vmul.f32 0.5, %v190_v33  ;;  %v94_v37 = vmul.f32 %v661_v31, %v93_v34 }
  0x97   :  { %v105_v38 = vmul.f32 0.5, %v104_v35 }
  0x98   :  { %v192_v39 = vsub.f32 1.5, %v191_v36  ;;  %v95_v40 = vmul.f32 0.5, %v94_v37  ;;  %v185_v41 = vpop.xlane.xlu0 %184 }
  0x99   :  { %v432_v42 = vpop.eup %431  ;;  %v106_v43 = vsub.f32 1.5, %v105_v38  ;;  %v668_v44 = vmax.f32 %v185_v41, 1e-24  ;;  %v153_v45 = vpop.xlane.xlu1 %152 }
  0x9a   :  { %v434_v46 = vpop.eup %433  ;;  %v193_v47 = vmul.f32 %v426_v24, %v192_v39  ;;  %v96_v48 = vsub.f32 1.5, %v95_v40  ;;  %v157_v49 = vmul.f32 %v432_v42, %v655_v25  ;;  %v676_v52 = vmax.f32 %v153_v45, 1e-24 }
  0x9b   :  { %v671_v50 = vpop.eup %435  ;;  %v135_v51 = vmul.f32 %v434_v46, %v657_v26  ;;  %437 = vrsqrt.f32 %v668_v44  ;;  %v107_v56 = vmul.f32 %v428_v28, %v106_v43  ;;  %vm163_vm10 = vweird.f32 %v432_v42 }
  0x9c   :  { %v197_v53 = vsel %vm196_vm4, %v426_v24, %v193_v47  ;;  %v158_v54 = vmul.f32 %v432_v42, %v157_v49  ;;  %v125_v55 = vmul.f32 %v671_v50, %v659_v30  ;;  %439 = vrsqrt.f32 %v676_v52  ;;  %vm164_vm12 = vmor %vm162_vm8, %vm163_vm10 }
  0x9d   :  { %v682_v57 = vmul.f32 %v197_v53, %v623_v0  ;;  %v136_v58 = vmul.f32 %v434_v46, %v135_v51  ;;  %v111_v61 = vsel %vm110_vm7, %v428_v28, %v107_v56  ;;  %v97_v62 = vmul.f32 %v661_v31, %v96_v48 }
  0x9e   :  { %v159_v59 = vmul.f32 0.5, %v158_v54  ;;  %v126_v60 = vmul.f32 %v671_v50, %v125_v55  ;;  %v113_v3 = vmul.f32 %v111_v61, %v625_v1  ;;  %vm141_vm11 = vweird.f32 %v434_v46 }
  0x9f   :  { %v137_v63 = vmul.f32 0.5, %v136_v58  ;;  %v314_v0 = vmul.f32 %v682_v57, %v682_v57  ;;  %v101_v10 = vsel %vm695_vm9, %v661_v31, %v97_v62  ;;  %vm142_vm14 = vmor %vm140_vm13, %vm141_vm11  ;;  %vm131_vm15 = vweird.f32 %v671_v50 }
  0xa0   :  { %v160_v5 = vsub.f32 1.5, %v159_v59  ;;  %v127_v9 = vmul.f32 0.5, %v126_v60  ;;  %236 = vmatpush.xpose.msra.mxu0 %v113_v3  ;;  %334 = vmatpush.xpose.msra.mxu2 %v113_v3  ;;  %v112_v18 = vmul.f32 %v101_v10, %v627_v2  ;;  %vm204_vm1 = vweird.f32 %v668_v44  ;;  %vm714_vm2 = vmor %vm130_vm0, %vm131_vm15 }
  0xa1   :  { %v438_v11 = vpop.eup %437  ;;  %v138_v14 = vsub.f32 1.5, %v137_v63  ;;  %316 = vadd.xlane.f32.xlu1 %v314_v0  ;;  %vm172_vm4 = vweird.f32 %v676_v52  ;;  %vm274_vm8 = vcmask 130048   ;;  %vm311_vm9 = vcmask 7168  }
  0xa2   :  { %v161_v1 = vmul.f32 %v432_v42, %v160_v5  ;;  %v128_v15 = vsub.f32 1.5, %v127_v9  ;;  %v199_v16 = vmul.f32 %v438_v11, %v668_v44  ;;  %v440_v17 = vpop.eup %439  ;;  %vm205_vm3 = vweird.f32 %v438_v11 }
  0xa3   :  { %v139_v19 = vmul.f32 %v434_v46, %v138_v14  ;;  %v167_v22 = vmul.f32 %v440_v17, %v676_v52  ;;  %vm173_vm5 = vweird.f32 %v440_v17  ;;  %vm206_vm6 = vmor %vm204_vm1, %vm205_vm3 }
  0xa4   :  { %v165_v20 = vsel %vm164_vm12, %v432_v42, %v161_v1  ;;  %v200_v21 = vmul.f32 %v438_v11, %v199_v16  ;;  %237 = vmatpush.xpose.msra.mxu0 %v112_v18  ;;  %335 = vmatpush.xpose.msra.mxu2 %v112_v18  ;;  %v129_v25 = vmul.f32 %v671_v50, %v128_v15  ;;  %vm174_vm7 = vmor %vm172_vm4, %vm173_vm5 }
  0xa5   :  { %v176_v23 = vmul.f32 %v165_v20, %v635_v6  ;;  %v143_v24 = vsel %vm142_vm14, %v434_v46, %v139_v19  ;;  %v168_v27 = vmul.f32 %v440_v17, %v167_v22 }
  0xa6   :  { %v201_v26 = vmul.f32 0.5, %v200_v21  ;;  %v145_v2 = vmul.f32 %v143_v24, %v637_v7  ;;  %v133_v7 = vsel %vm714_vm2, %v671_v50, %v129_v25 }
  0xa7   :  { %v216_v28 = vmul.f32 %v176_v23, %v176_v23  ;;  %v719_v31 = vmul.f32 %v682_v57, %v176_v23  ;;  %v169_v32 = vmul.f32 0.5, %v168_v27  ;;  %336 = vmatmul.f32.vlgmr.msra.gmra.mxu2 %v682_v57  ;;  %238 = vmatmul.f32.vlgmr.msra.gmra.mxu0 %v176_v23  ;;  %v144_v34 = vmul.f32 %v133_v7, %v639_v8 }
  0xa8   :  { %v202_v6 = vsub.f32 1.5, %v201_v26  ;;  %259 = vmatpush.xpose.msra.mxu1 %v145_v2  ;;  %357 = vmatpush.xpose.msra.mxu3 %v145_v2 }
  0xa9   :  { %v170_v33 = vsub.f32 1.5, %v169_v32  ;;  %218 = vadd.xlane.f32.xlu2 %v216_v28 }
  0xaa   :  { %v203_v30 = vmul.f32 %v438_v11, %v202_v6 }
  0xab   :  { %v171_v36 = vmul.f32 %v440_v17, %v170_v33 }
  0xac   :  { %v207_v35 = vsel %vm206_vm6, %v438_v11, %v203_v30  ;;  %260 = vmatpush.xpose.msra.mxu1 %v144_v34  ;;  %358 = vmatpush.xpose.msra.mxu3 %v144_v34 }
  0xad   :  { %v209_v37 = vmul.f32 %v207_v35, %v647_v12  ;;  %v175_v38 = vsel %vm174_vm7, %v440_v17, %v171_v36 }
  0xae   :  { %v177_v39 = vmul.f32 %v175_v38, %v649_v13 }
  0xaf   :  { %v315_v40 = vmul.f32 %v209_v37, %v209_v37  ;;  %261 = vmatmul.f32.vlgmr.msra.gmra.mxu1 %v176_v23  ;;  %359 = vmatmul.f32.vlgmr.msra.gmra.mxu3 %v682_v57 }
  0xb0   :  { %241 = vmatmul.f32.gmra.mxu0 %v177_v39  ;;  %339 = vmatmul.f32.gmra.mxu2 %v209_v37  ;;  %v217_v41 = vmul.f32 %v177_v39, %v177_v39  ;;  %v211_v42 = vmul.f32 %v209_v37, %v177_v39 }
  0xb1   :  { %318 = vadd.xlane.f32.xlu2 %v315_v40 }
  0xb2   :  { %220 = vadd.xlane.f32.xlu0 %v217_v41 }
  0xb7   :  { %264 = vmatmul.f32.gmra.mxu1 %v177_v39  ;;  %362 = vmatmul.f32.gmra.mxu3 %v209_v37 }
 0x114   :  { %v317_v24 = vpop.xlane.xlu1 %316 }
 0x115   :  { %v392_v34 = vmul.f32 2.0, %v317_v24 }
 0x117   :  { %v394_v37 = vmul.f32 1.442695, %v392_v34 }
 0x11c   :  { %v219_v22 = vpop.xlane.xlu2 %218 }
 0x11d   :  { %v295_v23 = vmul.f32 2.0, %v219_v22 }
 0x11f   :  { %v297_v27 = vmul.f32 1.442695, %v295_v23 }
 0x124   :  { %v239_v8 = vpop.f32.mrf.mxu0  ;;  %v319_v25 = vpop.xlane.xlu2 %318 }
 0x125   :  { %v268_v43 = vmul.f32 2.0, %v239_v8  ;;  %v221_v26 = vpop.xlane.xlu0 %220  ;;  %v393_v30 = vmul.f32 2.0, %v319_v25 }
 0x126   :  { %v296_v2 = vmul.f32 2.0, %v221_v26 }
 0x127   :  { %v270_v44 = vmul.f32 1.442695, %v268_v43 }
 0x128   :  { %v299_v32 = vmul.f32 1.442695, %v296_v2 }
 0x129   :  { %441 = vpow2.f32 %v270_v44 }
 0x12a   :  { %v337_v12 = vpop.f32.mrf.mxu2 }
 0x12b   :  { %v366_v45 = vmul.f32 2.0, %v337_v12 }
 0x12c   :  { %v262_v46 = vpop.f32.mrf.mxu1 }
 0x12d   :  { %v368_v13 = vmul.f32 1.442695, %v366_v45  ;;  %v281_v47 = vmul.f32 2.0, %v262_v46  ;;  %v242_v48 = vpop.f32.mrf.mxu0 }
 0x12e   :  { %v269_v49 = vmul.f32 2.0, %v242_v48 }
 0x12f   :  { %443 = vpow2.f32 %v368_v13  ;;  %v283_v50 = vmul.f32 1.442695, %v281_v47  ;;  %v442_v51 = vpop.eup %441 }
 0x130   :  { %v272_v52 = vmul.f32 1.442695, %v269_v49  ;;  %v275_v53 = vsel %vm274_vm8, %v442_v51, 0.0 }
 0x131   :  { %445 = vpow2.f32 %v283_v50  ;;  %276 = vadd.xlane.f32.xlu0 %v275_v53 }
 0x132   :  { %v360_v54 = vpop.f32.mrf.mxu3  ;;  %447 = vpow2.f32 %v272_v52 }
 0x133   :  { %v340_v55 = vpop.f32.mrf.mxu2  ;;  %v378_v60 = vmul.f32 2.0, %v360_v54 }
 0x134   :  { %v367_v56 = vmul.f32 2.0, %v340_v55  ;;  %v265_v57 = vpop.f32.mrf.mxu1 }
 0x135   :  { %v444_v58 = vpop.eup %443  ;;  %v282_v59 = vmul.f32 2.0, %v265_v57  ;;  %v380_v4 = vmul.f32 1.442695, %v378_v60 }
 0x136   :  { %v370_v61 = vmul.f32 1.442695, %v367_v56  ;;  %v372_v62 = vsel %vm274_vm8, %v444_v58, 0.0 }
 0x137   :  { %v446_v63 = vpop.eup %445  ;;  %v285_v3 = vmul.f32 1.442695, %v282_v59  ;;  %373 = vadd.xlane.f32.xlu1 %v372_v62 }
 0x138   :  { %449 = vpow2.f32 %v370_v61  ;;  %v287_v0 = vsel %vm274_vm8, %v446_v63, 0.0  ;;  %v448_v9 = vpop.eup %447 }
 0x139   :  { %451 = vpow2.f32 %v285_v3  ;;  %288 = vadd.xlane.f32.xlu2 %v287_v0  ;;  %v278_v1 = vsel %vm274_vm8, %v448_v9, 0.0 }
 0x13a   :  { %v363_v5 = vpop.f32.mrf.mxu3  ;;  %453 = vpow2.f32 %v380_v4 }
 0x13b   :  { %v379_v10 = vmul.f32 2.0, %v363_v5 }
 0x13d   :  { %v382_v11 = vmul.f32 1.442695, %v379_v10 }
 0x13e   :  { %v450_v14 = vpop.eup %449 }
 0x13f   :  { %v452_v15 = vpop.eup %451  ;;  %455 = vpow2.f32 %v382_v11  ;;  %279 = vadd.xlane.f32.xlu1 %v278_v1  ;;  %v375_v16 = vsel %vm274_vm8, %v450_v14, 0.0 }
 0x140   :  { %v290_v17 = vsel %vm274_vm8, %v452_v15, 0.0  ;;  %v454_v18 = vpop.eup %453  ;;  %457 = vpow2.f32 %v297_v27 }
 0x141   :  { %376 = vadd.xlane.f32.xlu2 %v375_v16  ;;  %291 = vadd.xlane.f32.xlu0 %v290_v17  ;;  %v384_v21 = vsel %vm274_vm8, %v454_v18, 0.0  ;;  %459 = vpow2.f32 %v299_v32 }
 0x145   :  { %v456_v19 = vpop.eup %455 }
 0x146   :  { %v387_v20 = vsel %vm274_vm8, %v456_v19, 0.0  ;;  %v458_v33 = vpop.eup %457 }
 0x147   :  { %388 = vadd.xlane.f32.xlu1 %v387_v20  ;;  %v460_v41 = vpop.eup %459 }
 0x149   :  { %212 = vadd.xlane.f32.xlu2 %v719_v31  ;;  %385 = vadd.xlane.f32.xlu0 %v384_v21  ;;  %v396_v31 = vmul.f32 1.442695, %v393_v30 }
 0x151   :  { %214 = vadd.xlane.f32.xlu0 %v211_v42 }
 0x1a4   :  { %v277_v29 = vpop.xlane.xlu0 %276 }
 0x1aa   :  { %v374_v28 = vpop.xlane.xlu1 %373 }
 0x1ac   :  { %v289_v6 = vpop.xlane.xlu2 %288 }
 0x1ad   :  { %v293_v7 = vadd.f32 %v289_v6, %v277_v29 }
 0x1af   :  { %v301_v35 = vsub.f32 %v293_v7, %v458_v33 }
 0x1b1   :  { %461 = vlog2.f32 %v301_v35 }
 0x1b2   :  { %v280_v36 = vpop.xlane.xlu1 %279  ;;  %463 = vpow2.f32 %v396_v31 }
 0x1b3   :  { %465 = vpow2.f32 %v394_v37 }
 0x1b4   :  { %v377_v38 = vpop.xlane.xlu2 %376  ;;  %v292_v39 = vpop.xlane.xlu0 %291 }
 0x1b5   :  { %v294_v40 = vadd.f32 %v292_v39, %v280_v36 }
 0x1b7   :  { %v302_v42 = vsub.f32 %v294_v40, %v460_v41  ;;  %v462_v8 = vpop.eup %461 }
 0x1b8   :  { %v464_v12 = vpop.eup %463  ;;  %v304_v47 = vmul.f32 0.6931472, %v462_v8 }
 0x1b9   :  { %467 = vlog2.f32 %v302_v42  ;;  %v466_v50 = vpop.eup %465 }
 0x1ba   :  { %v389_v43 = vpop.xlane.xlu1 %388 }
 0x1bb   :  { %v391_v44 = vadd.f32 %v389_v43, %v377_v38 }
 0x1bc   :  { %v213_v45 = vpop.xlane.xlu2 %212  ;;  %v386_v46 = vpop.xlane.xlu0 %385 }
 0x1bd   :  { %v399_v13 = vsub.f32 %v391_v44, %v464_v12  ;;  %v307_v48 = vmul.f32 2.0, %v213_v45  ;;  %v390_v49 = vadd.f32 %v386_v46, %v374_v28 }
 0x1bf   :  { %469 = vlog2.f32 %v399_v13  ;;  %v309_v51 = vsub.f32 %v304_v47, %v307_v48  ;;  %v398_v52 = vsub.f32 %v390_v49, %v466_v50  ;;  %v468_v53 = vpop.eup %467 }
 0x1c0   :  { %v306_v56 = vmul.f32 0.6931472, %v468_v53 }
 0x1c1   :  { %312 = vst.msk [vmem:[%s761_s4] sm:$0xff] %vm311_vm9, %v309_v51  ;;  %471 = vlog2.f32 %v398_v52 }
 0x1c4   :  { %v215_v54 = vpop.xlane.xlu0 %214 }
 0x1c5   :  { %v470_v55 = vpop.eup %469  ;;  %v308_v57 = vmul.f32 2.0, %v215_v54 }
 0x1c6   :  { %v403_v58 = vmul.f32 0.6931472, %v470_v55 }
 0x1c7   :  { %v472_v59 = vpop.eup %471  ;;  %v310_v60 = vsub.f32 %v306_v56, %v308_v57 }
 0x1c8   :  { %v401_v61 = vmul.f32 0.6931472, %v472_v59  ;;  %v405_v62 = vsub.f32 %v403_v58, %v308_v57 }
 0x1c9   :  { %313 = vst.msk [vmem:[%s761_s4 + $0x8] sm:$0xff] %vm311_vm9, %v310_v60 }
 0x1ca   :  { %v404_v63 = vsub.f32 %v401_v61, %v307_v48  ;;  %407 = vst.msk [vmem:[%s762_s5 + $0x8] sm:$0xff] %vm311_vm9, %v405_v62 }
 0x1cc   :  { %406 = vst.msk [vmem:[%s762_s5] sm:$0xff] %vm311_vm9, %v404_v63 }
 0x1cd   :  { %416 = vsyncpa [#allocation3], 1 }
 0x1ce   :  { %417 = vsyncpa [#allocation5], 1 }
 0x1cf   :  { %418 = vsyncpa [#allocation8], 1 }

</bundles_post_ra>
